<compile_context>
chip_gen: v7x
topology: tpu7x:2x2x1
jax: 0.10.0
libtpu: 0.0.40
codegen_flags: <defaults>
</compile_context>

<pallas_src>
import jax
import jax.numpy as jnp
from jax.experimental import pallas as pl
from jax.experimental.pallas import tpu as pltpu


def deep1_kernel(x_ref, w1_ref, wmid_ref, w6_ref, b_ref, o_ref):
    out_dim = o_ref.shape[-1]

    # Layer 1: (tile_b, in_dim) @ (in_dim, H) -> f32 accum, f32 bias add.
    h = jnp.dot(x_ref[...].astype(jnp.bfloat16), w1_ref[...],
                preferred_element_type=jnp.float32) + b_ref[0:1, :]

    # Layers 2-5: static unrolled loop over the stacked (4, H, H) weights.
    for i in range(4):
        h = jnp.dot(h.astype(jnp.bfloat16), wmid_ref[i],
                    preferred_element_type=jnp.float32) + b_ref[i + 1:i + 2, :]

    # Layer 6 -> logits (tile_b, out_dim).
    logits = jnp.dot(h.astype(jnp.bfloat16), w6_ref[...],
                     preferred_element_type=jnp.float32) + b_ref[5:6, :out_dim]

    # softmax over dim=1 (last axis of the 2-D output), fully in f32.
    m = jnp.max(logits, axis=-1, keepdims=True)
    e = jnp.exp(logits - m)
    denom = jnp.sum(e, axis=-1, keepdims=True)
    o_ref[...] = (e * pl.reciprocal(denom, approx=True)).astype(o_ref.dtype)


def _round_up(n, m):
    return ((n + m - 1) // m) * m


def deep1_forward(x, params, max_tile_b=256):
    """params: list of (W, b) with W shaped (in, out), b shaped (1, out).

    Hidden widths of layers 1..5 must be equal (they are stacked into one slab).
    """
    batch, in_dim = x.shape
    hid = params[0][0].shape[1]
    out_dim = params[-1][0].shape[1]

    # Sanity of the packing layout.
    for w, _ in params[1:5]:
        assert w.shape == (hid, hid), "hidden layers must share one width"
    assert params[5][0].shape == (hid, out_dim)
    assert out_dim <= hid, "bias slab packs out_dim into the hidden width"

    # --- operand packing (cuts 13 tiny DMAs down to 5) ---
    w1 = params[0][0].astype(jnp.bfloat16)                              # (in, H)
    wmid = jnp.stack([params[i][0] for i in range(1, 5)]).astype(jnp.bfloat16)  # (4,H,H)
    w6 = params[5][0].astype(jnp.bfloat16)                              # (H, out)
    b_stack = jnp.zeros((6, hid), jnp.float32)
    for i, (_, b) in enumerate(params):
        b_stack = b_stack.at[i, : b.shape[1]].set(b[0].astype(jnp.float32))

    # --- batch tiling: tile rounded up to sublane multiple, capped at 256 ---
    tile_b = min(max_tile_b, _round_up(batch, 8))
    padded = _round_up(batch, tile_b)
    x_p = x if padded == batch else jnp.pad(x, ((0, padded - batch), (0, 0)))

    out_padded = pl.pallas_call(
        deep1_kernel,
        out_shape=jax.ShapeDtypeStruct((padded, out_dim), jnp.float32),
        grid_spec=pltpu.PrefetchScalarGridSpec(
            num_scalar_prefetch=0,
            grid=(padded // tile_b,),
            in_specs=[
                pl.BlockSpec((tile_b, in_dim), lambda i: (i, 0)),     # x: batch-tiled
                pl.BlockSpec((in_dim, hid), lambda i: (0, 0)),        # w1: resident
                pl.BlockSpec((4, hid, hid), lambda i: (0, 0, 0)),     # w2..w5: resident
                pl.BlockSpec((hid, out_dim), lambda i: (0, 0)),       # w6: resident
                pl.BlockSpec((6, hid), lambda i: (0, 0)),             # biases: resident
            ],
            out_specs=pl.BlockSpec((tile_b, out_dim), lambda i: (i, 0)),
        ),
        compiler_params=pltpu.CompilerParams(
            dimension_semantics=("parallel",)),
    )(x_p, w1, wmid, w6, b_stack)

    return out_padded[:batch]


def init_params(key, dims):
    """Deterministic PyTorch-Linear-style init: U(-1/sqrt(fan_in), 1/sqrt(fan_in))."""
    params = []
    for i in range(len(dims) - 1):
        fan_in, fan_out = dims[i], dims[i + 1]
        key, kw, kb = jax.random.split(key, 3)
        bound = 1.0 / jnp.sqrt(fan_in)
        w = jax.random.uniform(kw, (fan_in, fan_out), jnp.float32, -bound, bound)
        b = jax.random.uniform(kb, (1, fan_out), jnp.float32, -bound, bound)
        params.append((w, b))
    return params


if __name__ == "__main__":
    # deep1(in_dim, n_hidden_1..5, out_dim)
    in_dim, hid, out_dim = 32, 64, 16
    batch = 8

    key = jax.random.PRNGKey(0)
    key, kx = jax.random.split(key)
    x = jax.random.normal(kx, (batch, in_dim), jnp.float32)

    params = init_params(key, [in_dim, hid, hid, hid, hid, hid, out_dim])

    out = deep1_forward(x, params)
    out = jax.block_until_ready(out)

    # reference check in plain JAX (f32); kernel uses bf16 MXU operands with f32
    # accumulation, so tolerance is relaxed accordingly.
    ref = x
    for w, b in params:
        ref = ref @ w + b
    ref = jax.nn.softmax(ref, axis=1)

    assert out.shape == (batch, out_dim)
    assert jnp.allclose(out, ref, atol=3e-2, rtol=3e-2)
    assert jnp.allclose(jnp.sum(out, axis=1), 1.0, atol=1e-2)

    print("KERNEL_OK")
</pallas_src>

<mosaic_0001>
module attributes {stable_mosaic.version = 11 : i64} {
  func.func @deep1_kernel(%arg0: i32, %arg1: memref<8x32xf32, #tpu.memory_space<vmem>>, %arg2: memref<32x64xbf16, #tpu.memory_space<vmem>>, %arg3: memref<4x64x64xbf16, #tpu.memory_space<vmem>>, %arg4: memref<64x16xbf16, #tpu.memory_space<vmem>>, %arg5: memref<6x64xf32, #tpu.memory_space<vmem>>, %arg6: memref<8x16xf32, #tpu.memory_space<vmem>>) attributes {dimension_semantics = [#tpu.dimension_semantics<parallel>], iteration_bounds = array<i64: 1>, scalar_prefetch = 0 : i64, scratch_operands = 0 : i64, tpu.core_type = #tpu.core_type<tc>, window_params = [{transform_indices = @transform_0, window_bounds = array<i64: 8, 32>}, {pipeline_mode = #tpu.pipeline_mode<synchronous>, transform_indices = @transform_1, window_bounds = array<i64: 32, 64>}, {pipeline_mode = #tpu.pipeline_mode<synchronous>, transform_indices = @transform_2, window_bounds = array<i64: 4, 64, 64>}, {pipeline_mode = #tpu.pipeline_mode<synchronous>, transform_indices = @transform_3, window_bounds = array<i64: 64, 16>}, {pipeline_mode = #tpu.pipeline_mode<synchronous>, transform_indices = @transform_4, window_bounds = array<i64: 6, 64>}, {transform_indices = @transform_5, window_bounds = array<i64: 8, 16>}]} {
    %c0 = arith.constant 0 : index
    %c0_0 = arith.constant 0 : index
    %0 = vector.load %arg1[%c0, %c0_0] : memref<8x32xf32, #tpu.memory_space<vmem>>, vector<8x32xf32>
    %1 = arith.truncf %0 : vector<8x32xf32> to vector<8x32xbf16>
    %c0_1 = arith.constant 0 : index
    %c0_2 = arith.constant 0 : index
    %2 = vector.load %arg2[%c0_1, %c0_2] : memref<32x64xbf16, #tpu.memory_space<vmem>>, vector<32x64xbf16>
    %cst = arith.constant dense<0.000000e+00> : vector<8x64xf32>
    %3 = tpu.matmul %1, %2, %cst {dimension_numbers = #tpu.dot_dimension_numbers<[1], [0], [0], [1], [0, 0, 1, 1], [], []>} : vector<8x32xbf16>, vector<32x64xbf16>, vector<8x64xf32> -> vector<8x64xf32>
    %c0_3 = arith.constant 0 : index
    %c0_4 = arith.constant 0 : index
    %4 = vector.load %arg5[%c0_3, %c0_4] : memref<6x64xf32, #tpu.memory_space<vmem>>, vector<1x64xf32>
    %5 = vector.broadcast %4 : vector<1x64xf32> to vector<8x64xf32>
    %6 = arith.addf %3, %5 : vector<8x64xf32>
    %7 = arith.truncf %6 : vector<8x64xf32> to vector<8x64xbf16>
    %c0_5 = arith.constant 0 : index
    %c0_6 = arith.constant 0 : index
    %c0_7 = arith.constant 0 : index
    %8 = vector.load %arg3[%c0_5, %c0_6, %c0_7] : memref<4x64x64xbf16, #tpu.memory_space<vmem>>, vector<1x64x64xbf16>
    %9 = vector.shape_cast %8 : vector<1x64x64xbf16> to vector<64x64xbf16>
    %cst_8 = arith.constant dense<0.000000e+00> : vector<8x64xf32>
    %10 = tpu.matmul %7, %9, %cst_8 {dimension_numbers = #tpu.dot_dimension_numbers<[1], [0], [0], [1], [0, 0, 1, 1], [], []>} : vector<8x64xbf16>, vector<64x64xbf16>, vector<8x64xf32> -> vector<8x64xf32>
    %c1 = arith.constant 1 : index
    %c0_9 = arith.constant 0 : index
    %11 = vector.load %arg5[%c1, %c0_9] : memref<6x64xf32, #tpu.memory_space<vmem>>, vector<1x64xf32>
    %12 = vector.broadcast %11 : vector<1x64xf32> to vector<8x64xf32>
    %13 = arith.addf %10, %12 : vector<8x64xf32>
    %14 = arith.truncf %13 : vector<8x64xf32> to vector<8x64xbf16>
    %c1_10 = arith.constant 1 : index
    %c0_11 = arith.constant 0 : index
    %c0_12 = arith.constant 0 : index
    %15 = vector.load %arg3[%c1_10, %c0_11, %c0_12] : memref<4x64x64xbf16, #tpu.memory_space<vmem>>, vector<1x64x64xbf16>
    %16 = vector.shape_cast %15 : vector<1x64x64xbf16> to vector<64x64xbf16>
    %cst_13 = arith.constant dense<0.000000e+00> : vector<8x64xf32>
    %17 = tpu.matmul %14, %16, %cst_13 {dimension_numbers = #tpu.dot_dimension_numbers<[1], [0], [0], [1], [0, 0, 1, 1], [], []>} : vector<8x64xbf16>, vector<64x64xbf16>, vector<8x64xf32> -> vector<8x64xf32>
    %c2 = arith.constant 2 : index
    %c0_14 = arith.constant 0 : index
    %18 = vector.load %arg5[%c2, %c0_14] : memref<6x64xf32, #tpu.memory_space<vmem>>, vector<1x64xf32>
    %19 = vector.broadcast %18 : vector<1x64xf32> to vector<8x64xf32>
    %20 = arith.addf %17, %19 : vector<8x64xf32>
    %21 = arith.truncf %20 : vector<8x64xf32> to vector<8x64xbf16>
    %c2_15 = arith.constant 2 : index
    %c0_16 = arith.constant 0 : index
    %c0_17 = arith.constant 0 : index
    %22 = vector.load %arg3[%c2_15, %c0_16, %c0_17] : memref<4x64x64xbf16, #tpu.memory_space<vmem>>, vector<1x64x64xbf16>
    %23 = vector.shape_cast %22 : vector<1x64x64xbf16> to vector<64x64xbf16>
    %cst_18 = arith.constant dense<0.000000e+00> : vector<8x64xf32>
    %24 = tpu.matmul %21, %23, %cst_18 {dimension_numbers = #tpu.dot_dimension_numbers<[1], [0], [0], [1], [0, 0, 1, 1], [], []>} : vector<8x64xbf16>, vector<64x64xbf16>, vector<8x64xf32> -> vector<8x64xf32>
    %c3 = arith.constant 3 : index
    %c0_19 = arith.constant 0 : index
    %25 = vector.load %arg5[%c3, %c0_19] : memref<6x64xf32, #tpu.memory_space<vmem>>, vector<1x64xf32>
    %26 = vector.broadcast %25 : vector<1x64xf32> to vector<8x64xf32>
    %27 = arith.addf %24, %26 : vector<8x64xf32>
    %28 = arith.truncf %27 : vector<8x64xf32> to vector<8x64xbf16>
    %c3_20 = arith.constant 3 : index
    %c0_21 = arith.constant 0 : index
    %c0_22 = arith.constant 0 : index
    %29 = vector.load %arg3[%c3_20, %c0_21, %c0_22] : memref<4x64x64xbf16, #tpu.memory_space<vmem>>, vector<1x64x64xbf16>
    %30 = vector.shape_cast %29 : vector<1x64x64xbf16> to vector<64x64xbf16>
    %cst_23 = arith.constant dense<0.000000e+00> : vector<8x64xf32>
    %31 = tpu.matmul %28, %30, %cst_23 {dimension_numbers = #tpu.dot_dimension_numbers<[1], [0], [0], [1], [0, 0, 1, 1], [], []>} : vector<8x64xbf16>, vector<64x64xbf16>, vector<8x64xf32> -> vector<8x64xf32>
    %c4 = arith.constant 4 : index
    %c0_24 = arith.constant 0 : index
    %32 = vector.load %arg5[%c4, %c0_24] : memref<6x64xf32, #tpu.memory_space<vmem>>, vector<1x64xf32>
    %33 = vector.broadcast %32 : vector<1x64xf32> to vector<8x64xf32>
    %34 = arith.addf %31, %33 : vector<8x64xf32>
    %35 = arith.truncf %34 : vector<8x64xf32> to vector<8x64xbf16>
    %c0_25 = arith.constant 0 : index
    %c0_26 = arith.constant 0 : index
    %36 = vector.load %arg4[%c0_25, %c0_26] : memref<64x16xbf16, #tpu.memory_space<vmem>>, vector<64x16xbf16>
    %cst_27 = arith.constant dense<0.000000e+00> : vector<8x16xf32>
    %37 = tpu.matmul %35, %36, %cst_27 {dimension_numbers = #tpu.dot_dimension_numbers<[1], [0], [0], [1], [0, 0, 1, 1], [], []>} : vector<8x64xbf16>, vector<64x16xbf16>, vector<8x16xf32> -> vector<8x16xf32>
    %c5 = arith.constant 5 : index
    %c0_28 = arith.constant 0 : index
    %38 = vector.load %arg5[%c5, %c0_28] : memref<6x64xf32, #tpu.memory_space<vmem>>, vector<1x16xf32>
    %39 = vector.broadcast %38 : vector<1x16xf32> to vector<8x16xf32>
    %40 = arith.addf %37, %39 : vector<8x16xf32>
    %cst_29 = arith.constant dense<0xFF800000> : vector<8xf32>
    %41 = vector.multi_reduction <maximumf>, %40, %cst_29 [1] : vector<8x16xf32> to vector<8xf32>
    %42 = vector.shape_cast %41 : vector<8xf32> to vector<8x1xf32>
    %43 = vector.broadcast %42 : vector<8x1xf32> to vector<8x16xf32>
    %44 = arith.subf %40, %43 : vector<8x16xf32>
    %45 = math.exp %44 : vector<8x16xf32>
    %cst_30 = arith.constant dense<0.000000e+00> : vector<8xf32>
    %46 = vector.multi_reduction <add>, %45, %cst_30 [1] : vector<8x16xf32> to vector<8xf32>
    %47 = vector.shape_cast %46 : vector<8xf32> to vector<8x1xf32>
    %48 = tpu.reciprocal %47 {approx = true} : vector<8x1xf32> -> vector<8x1xf32>
    %49 = vector.broadcast %48 : vector<8x1xf32> to vector<8x16xf32>
    %50 = arith.mulf %45, %49 : vector<8x16xf32>
    %c0_31 = arith.constant 0 : index
    %c0_32 = arith.constant 0 : index
    %51 = vector.load %arg6[%c0_31, %c0_32] : memref<8x16xf32, #tpu.memory_space<vmem>>, vector<8x16xf32>
    tpu.vector_store %arg6[%c0_31, %c0_32], %50 {strides = array<i32>} : memref<8x16xf32, #tpu.memory_space<vmem>>, vector<8x16xf32>,
    return
  }
  func.func @transform_0(%arg0: i32) -> (i32, i32) {
    %c0_i32 = arith.constant 0 : i32
    %c0_i32_0 = arith.constant 0 : i32
    return %arg0, %c0_i32 : i32, i32
  }
  func.func @transform_1(%arg0: i32) -> (i32, i32) {
    %c0_i32 = arith.constant 0 : i32
    %c0_i32_0 = arith.constant 0 : i32
    %c0_i32_1 = arith.constant 0 : i32
    return %c0_i32, %c0_i32_0 : i32, i32
  }
  func.func @transform_2(%arg0: i32) -> (i32, i32, i32) {
    %c0_i32 = arith.constant 0 : i32
    %c0_i32_0 = arith.constant 0 : i32
    %c0_i32_1 = arith.constant 0 : i32
    %c0_i32_2 = arith.constant 0 : i32
    return %c0_i32, %c0_i32_0, %c0_i32_1 : i32, i32, i32
  }
  func.func @transform_3(%arg0: i32) -> (i32, i32) {
    %c0_i32 = arith.constant 0 : i32
    %c0_i32_0 = arith.constant 0 : i32
    %c0_i32_1 = arith.constant 0 : i32
    return %c0_i32, %c0_i32_0 : i32, i32
  }
  func.func @transform_4(%arg0: i32) -> (i32, i32) {
    %c0_i32 = arith.constant 0 : i32
    %c0_i32_0 = arith.constant 0 : i32
    %c0_i32_1 = arith.constant 0 : i32
    return %c0_i32, %c0_i32_0 : i32, i32
  }
  func.func @transform_5(%arg0: i32) -> (i32, i32) {
    %c0_i32 = arith.constant 0 : i32
    %c0_i32_0 = arith.constant 0 : i32
    return %arg0, %c0_i32 : i32, i32
  }
}

</mosaic_0001>

<bundles_post_ra>
// kernel: tpu_custom_call.1
= control target key start
LH: loop header
LB: loop body
LE: loop exit
PB: predicated region body
PF: predicated region fallthrough
CT: control target
= control target key end

     0   :  { %10 = vsyncpa [#allocation3], 0  ;;  %s891_s0 = inlined_call_operand.vmem [shape: f32[8,32], index: 0, kind: input, shape index: {}]   ;;  %s892_s1 = inlined_call_operand.vmem [shape: bf16[32,64], index: 1, kind: input, shape index: {}]   ;;  %s893_s2 = inlined_call_operand.hbm [shape: bf16[4,64,64], index: 2, kind: input, shape index: {}]   ;;  %s894_s3 = inlined_call_operand.vmem [shape: bf16[64,16], index: 3, kind: input, shape index: {}]   ;;  %s895_s4 = inlined_call_operand.vmem [shape: f32[6,64], index: 4, kind: input, shape index: {}]   ;;  %s896_s5 = inlined_call_operand.hbm [shape: f32[8,16], index: 5, kind: output, shape index: {}]  }
   0x1   :  { %11 = vsyncpa [#allocation4], 0  ;;  %s750_s18 = smov [#allocation2]   ;;  %s702_s22 = scalar_lea.hbm %s893_s2, 2048 }
   0x2   :  { %s21_s19 = sshll.u32 %s750_s18, 4  ;;  %p703_p0 = scmp.ne.s32.totalorder %s893_s2, %s702_s22  ;;  %s22_s19 = int_to_ptr.vmem [resolvable:$true] %s21_s19 }
   0x3   :  { %p706_p1 = scmp.lt.u32.totalorder %s702_s22, %s893_s2 }
   0x5   :  { %p708_p2 = pnand %p706_p1, %p703_p0 }
   0x7   :  { %711 = shalt.err (!%p708_p2)
}
   0x8   :  { %s712_s27 = scalar_lea.vmem %s22_s19, 2048  ;;  %p717_p4 = scmp.lt.s32.totalorder %s22_s19, %s22_s19 }
   0x9   :  { %p713_p3 = scmp.ne.s32.totalorder %s22_s19, %s712_s27  ;;  %p718_p5 = scmp.lt.s32.totalorder %s712_s27, %s712_s27 }
   0xb   :  { %p719_p6 = por %p718_p5, %p717_p4 }
   0xd   :  { %p720_p7 = pnand %p719_p6, %p713_p3 }
   0xf   :  { %723 = shalt.err (!%p720_p7)
}
  0x10   :  { %s751_s28 = smov 64   ;;  %s752_s29 = smov 4  }
  0x11   :  { %27 = dma.hbm_to_vmem [thread:$0]  %s893_s2, 2048, %s22_s19, [#allocation3], %s751_s28, %s751_s28, %s752_s29  }
  0x12   :  { %746 = dma.done.wait [#allocation3], 2048  }
  0x13   :  { %747 = vsyncadd [#allocation3], 4294965248  ;;  %v753_v0 = vmov 0.0   ;;  %vm754_vm0 = vmmov 0   ;;  %v676_v1 = vld [vmem:[%s892_s1] sm:$0xff]   ;;  %v677_v2 = vld [vmem:[%s892_s1 + $0x8] sm:$0xff]  }
  0x14   :  { %602 = vmatprep.subr.bf16.mxu0 %v753_v0  ;;  %606 = vmatprep.mubr.msk.bf16.mxu0 %vm754_vm0, %v753_v0  ;;  %v36_v3 = vld [vmem:[%s891_s0] sm:$0xff]  ;;  %vm59_vm1 = vcmask 261120   ;;  %v679_v6 = vld [vmem:[#allocation2 + $0x8] sm:$0xff]   ;;  %v680_v7 = vld [vmem:[#allocation2 + $0x10] sm:$0xff]   ;;  %vm141_vm2 = vcmask 523264   ;;  %vm512_vm3 = vcmask 130048  }
  0x15   :  { %610 = vmatprep.subr.bf16.mxu1 %v753_v0  ;;  %618 = vmatprep.mubr.msk.bf16.mxu1 %vm754_vm0, %v753_v0  ;;  %v678_v4 = vld [vmem:[#allocation2] sm:$0xff]   ;;  %v37_v5 = vpack.c.bf16 %v36_v3, %v36_v3  ;;  %v681_v8 = vld [vmem:[#allocation2 + $0x18] sm:$0xff]   ;;  %v683_v10 = vld [vmem:[#allocation2 + $0x28] sm:$0xff]  }
  0x16   :  { %603 = vmatpush3.bf16.msra.mxu0 %v676_v1  ;;  %611 = vmatpush3.bf16.msra.mxu1 %v678_v4  ;;  %v682_v9 = vld [vmem:[#allocation2 + $0x20] sm:$0xff]   ;;  %v684_v11 = vld [vmem:[#allocation2 + $0x30] sm:$0xff]   ;;  %v685_v19 = vld [vmem:[#allocation2 + $0x38] sm:$0xff]  }
  0x17   :  { %604 = vmatprep.subr.bf16.mxu0 %v753_v0  ;;  %612 = vmatprep.subr.bf16.mxu1 %v753_v0  ;;  %v540_v12 = vld [vmem:[%s895_s4] ss:$0 sm:$0xff]  ;;  %v687_v21 = vld [vmem:[#allocation2 + $0x48] sm:$0xff]   ;;  %v688_v22 = vld [vmem:[#allocation2 + $0x50] sm:$0xff]  }
  0x18   :  { %v686_v20 = vld [vmem:[#allocation2 + $0x40] sm:$0xff]   ;;  %v689_v30 = vld [vmem:[#allocation2 + $0x58] sm:$0xff]   ;;  %v691_v32 = vld [vmem:[#allocation2 + $0x68] sm:$0xff]  }
  0x19   :  { %v544_v23 = vld [vmem:[%s895_s4 + $0x1] ss:$0 sm:$0xff]  ;;  %v692_v33 = vld [vmem:[#allocation2 + $0x70] sm:$0xff]   ;;  %v550_v34 = vld [vmem:[%s895_s4 + $0x2] ss:$0 sm:$0xff] }
  0x1a   :  { %605 = vmatpush3.bf16.msra.mxu0 %v677_v2  ;;  %613 = vmatpush3.bf16.msra.mxu1 %v679_v6  ;;  %v690_v31 = vld [vmem:[#allocation2 + $0x60] sm:$0xff]   ;;  %v693_v41 = vld [vmem:[#allocation2 + $0x78] sm:$0xff]   ;;  %v695_v43 = vld [vmem:[%s894_s3 + $0x8] sm:$0xff]  }
  0x1b   :  { %622 = vmatprep.subr.bf16.mxu0 %v753_v0  ;;  %614 = vmatprep.subr.bf16.mxu1 %v753_v0  ;;  %v694_v42 = vld [vmem:[%s894_s3] sm:$0xff]   ;;  %v696_v44 = vld [vmem:[%s894_s3 + $0x10] sm:$0xff]   ;;  %v697_v52 = vld [vmem:[%s894_s3 + $0x18] sm:$0xff]   ;;  %s755_s3 = smov [#allocation5]  }
  0x1c   :  { %v556_v45 = vld [vmem:[%s895_s4 + $0x3] ss:$0 sm:$0xff]  ;;  %v562_v53 = vld [vmem:[%s895_s4 + $0x4] ss:$0 sm:$0xff]  ;;  %v568_v60 = vld [vmem:[%s895_s4 + $0x5] ss:$0 sm:$0xff] }
  0x1d   :  { %607 = vmatmul.mubr.msk.bf16.vlgmr.msra.gmra.mrb[0].mxu0 %vm59_vm1, %v37_v5  ;;  %s531_s4 = sshll.u32 %s755_s3, 4  ;;  %s532_s4 = int_to_ptr.vmem [resolvable:$true] %s531_s4 }
  0x1e   :  { %630 = vmatprep.mubr.msk.bf16.mxu0 %vm754_vm0, %v753_v0  ;;  %615 = vmatpush3.bf16.msra.mxu1 %v680_v7  ;;  %s724_s30 = scalar_lea.vmem %s532_s4, 128  ;;  %p729_p9 = scmp.lt.s32.totalorder %s532_s4, %s532_s4 }
  0x1f   :  { %616 = vmatprep.subr.bf16.mxu1 %v753_v0  ;;  %623 = vmatpush3.bf16.msra.mxu0 %v682_v9  ;;  %p725_p8 = scmp.ne.s32.totalorder %s532_s4, %s724_s30  ;;  %p730_p10 = scmp.lt.s32.totalorder %s724_s30, %s724_s30 }
  0x20   :  { %624 = vmatprep.subr.bf16.mxu0 %v753_v0 }
  0x21   :  { %p731_p11 = por %p730_p10, %p729_p9 }
  0x22   :  { %617 = vmatpush3.bf16.msra.mxu1 %v681_v8 }
  0x23   :  { %634 = vmatprep.subr.bf16.mxu1 %v753_v0  ;;  %625 = vmatpush3.bf16.msra.mxu0 %v683_v10  ;;  %p732_p12 = pnand %p731_p11, %p725_p8 }
  0x24   :  { %626 = vmatprep.subr.bf16.mxu0 %v753_v0 }
  0x27   :  { %627 = vmatpush3.bf16.msra.mxu0 %v684_v11 }
  0x28   :  { %628 = vmatprep.subr.bf16.mxu0 %v753_v0 }
  0x2b   :  { %629 = vmatpush3.bf16.msra.mxu0 %v685_v19 }
  0x2c   :  { %646 = vmatprep.subr.bf16.mxu0 %v753_v0 }
  0xf0   :  { %v97_v13 = vpop.f32.mrb[0].mxu0 }
  0xf1   :  { %v98_v14 = vadd.f32 %v540_v12, %v97_v13  ;;  %v608_v15 = vpop.f32.mrb[1].mxu0 }
  0xf2   :  { %v100_v16 = vpop.f32.mrb[2].mxu0 }
  0xf3   :  { %v103_v17 = vpack.c.bf16 %v98_v14, %v98_v14  ;;  %v609_v18 = vpop.f32.mrb[3].mxu0 }
  0xf5   :  { %619 = vmatmul.mubr.msk.bf16.vlgmr.msra.gmra.mrb[0].mxu1 %vm141_vm2, %v103_v17 }
  0xf6   :  { %642 = vmatprep.mubr.msk.bf16.mxu1 %vm754_vm0, %v753_v0  ;;  %635 = vmatpush3.bf16.msra.mxu1 %v686_v20 }
  0xf7   :  { %636 = vmatprep.subr.bf16.mxu1 %v753_v0 }
  0xfa   :  { %637 = vmatpush3.bf16.msra.mxu1 %v687_v21 }
  0xfb   :  { %638 = vmatprep.subr.bf16.mxu1 %v753_v0 }
  0xfe   :  { %639 = vmatpush3.bf16.msra.mxu1 %v688_v22 }
  0xff   :  { %640 = vmatprep.subr.bf16.mxu1 %v753_v0 }
 0x102   :  { %641 = vmatpush3.bf16.msra.mxu1 %v689_v30 }
 0x103   :  { %658 = vmatprep.subr.bf16.mxu1 %v753_v0 }
 0x1c8   :  { %v179_v24 = vpop.f32.mrb[0].mxu1 }
 0x1c9   :  { %v180_v25 = vadd.f32 %v544_v23, %v179_v24  ;;  %v620_v26 = vpop.f32.mrb[1].mxu1 }
 0x1ca   :  { %v182_v27 = vpop.f32.mrb[2].mxu1 }
 0x1cb   :  { %v185_v28 = vpack.c.bf16 %v180_v25, %v180_v25  ;;  %v621_v29 = vpop.f32.mrb[3].mxu1 }
 0x1cd   :  { %631 = vmatmul.mubr.msk.bf16.vlgmr.msra.gmra.mrb[4].mxu0 %vm141_vm2, %v185_v28 }
 0x1ce   :  { %654 = vmatprep.mubr.msk.bf16.mxu0 %vm754_vm0, %v753_v0  ;;  %647 = vmatpush3.bf16.msra.mxu0 %v690_v31 }
 0x1cf   :  { %648 = vmatprep.subr.bf16.mxu0 %v753_v0 }
 0x1d2   :  { %649 = vmatpush3.bf16.msra.mxu0 %v691_v32 }
 0x1d3   :  { %650 = vmatprep.subr.bf16.mxu0 %v753_v0 }
 0x1d6   :  { %651 = vmatpush3.bf16.msra.mxu0 %v692_v33 }
 0x1d7   :  { %652 = vmatprep.subr.bf16.mxu0 %v753_v0 }
 0x1da   :  { %653 = vmatpush3.bf16.msra.mxu0 %v693_v41 }
 0x2a0   :  { %v261_v35 = vpop.f32.mrb[4].mxu0 }
 0x2a1   :  { %v262_v36 = vadd.f32 %v550_v34, %v261_v35  ;;  %v632_v37 = vpop.f32.mrb[5].mxu0 }
 0x2a2   :  { %v264_v38 = vpop.f32.mrb[6].mxu0 }
 0x2a3   :  { %v267_v39 = vpack.c.bf16 %v262_v36, %v262_v36  ;;  %v633_v40 = vpop.f32.mrb[7].mxu0 }
 0x2a5   :  { %643 = vmatmul.mubr.msk.bf16.vlgmr.msra.gmra.mrb[4].mxu1 %vm141_vm2, %v267_v39 }
 0x2a6   :  { %666 = vmatprep.mubr.msk.bf16.mxu1 %vm754_vm0, %v753_v0  ;;  %659 = vmatpush3.bf16.msra.mxu1 %v694_v42 }
 0x2a7   :  { %660 = vmatprep.subr.bf16.mxu1 %v753_v0 }
 0x2aa   :  { %661 = vmatpush3.bf16.msra.mxu1 %v695_v43 }
 0x2ab   :  { %662 = vmatprep.subr.bf16.mxu1 %v753_v0 }
 0x2ae   :  { %663 = vmatpush3.bf16.msra.mxu1 %v696_v44 }
 0x2af   :  { %664 = vmatprep.subr.bf16.mxu1 %v753_v0 }
 0x2b2   :  { %665 = vmatpush3.bf16.msra.mxu1 %v697_v52 }
 0x378   :  { %v343_v46 = vpop.f32.mrb[4].mxu1 }
 0x379   :  { %v344_v47 = vadd.f32 %v556_v45, %v343_v46  ;;  %v644_v48 = vpop.f32.mrb[5].mxu1 }
 0x37a   :  { %v346_v49 = vpop.f32.mrb[6].mxu1 }
 0x37b   :  { %v349_v50 = vpack.c.bf16 %v344_v47, %v344_v47  ;;  %v645_v51 = vpop.f32.mrb[7].mxu1 }
 0x37d   :  { %655 = vmatmul.mubr.msk.bf16.vlgmr.msra.gmra.mrb[8].mxu0 %vm141_vm2, %v349_v50 }
 0x450   :  { %v425_v54 = vpop.f32.mrb[8].mxu0 }
 0x451   :  { %v426_v55 = vadd.f32 %v562_v53, %v425_v54  ;;  %v656_v56 = vpop.f32.mrb[9].mxu0 }
 0x452   :  { %v428_v57 = vpop.f32.mrb[10].mxu0 }
 0x453   :  { %v431_v58 = vpack.c.bf16 %v426_v55, %v426_v55  ;;  %v657_v59 = vpop.f32.mrb[11].mxu0 }
 0x455   :  { %667 = vmatmul.mubr.msk.bf16.vlgmr.msra.gmra.mrb[8].mxu1 %vm141_vm2, %v431_v58 }
 0x528   :  { %v506_v61 = vpop.f32.mrb[8].mxu1 }
 0x529   :  { %v507_v62 = vadd.f32 %v568_v60, %v506_v61  ;;  %v668_v63 = vpop.f32.mrb[9].mxu1 }
 0x52a   :  { %v509_v0 = vpop.f32.mrb[10].mxu1 }
 0x52b   :  { %v669_v1 = vpop.f32.mrb[11].mxu1  ;;  %v513_v2 = vsel %vm512_vm3, %v507_v62, -inf }
 0x52c   :  { %514 = vmax.xlane.f32.xlu0 %v513_v2 }
 0x5b9   :  { %v515_v3 = vpop.xlane.xlu0 %514 }
 0x5ba   :  { %v516_v4 = vsub.f32 %v507_v62, %v515_v3 }
 0x5bc   :  { %v517_v5 = vmul.f32 1.442695, %v516_v4 }
 0x5be   :  { %698 = vpow2.f32 %v517_v5 }
 0x5c8   :  { %v699_v6 = vpop.eup %698 }
 0x5c9   :  { %v519_v7 = vsel %vm512_vm3, %v699_v6, 0.0 }
 0x5ca   :  { %520 = vadd.xlane.f32.xlu0 %v519_v7 }
 0x657   :  { %v521_v8 = vpop.xlane.xlu0 %520 }
 0x658   :  { %700 = vrcp.f32 %v521_v8 }
 0x662   :  { %v701_v9 = vpop.eup %700 }
 0x663   :  { %v523_v10 = vmul.f32 %v701_v9, %v699_v6 }
 0x665   :  { %524 = vst.msk [vmem:[#allocation5] sm:$0xff] %vm512_vm3, %v523_v10 }
 0x666   :  { %735 = shalt.err (!%p732_p12)
}
 0x667   :  { %s736_s8 = scalar_lea.hbm %s896_s5, 128 }
 0x668   :  { %p737_p13 = scmp.ne.s32.totalorder %s896_s5, %s736_s8  ;;  %p740_p0 = scmp.lt.u32.totalorder %s736_s8, %s896_s5 }
 0x66a   :  { %p742_p1 = pnand %p740_p0, %p737_p13 }
 0x66c   :  { %745 = shalt.err (!%p742_p1)
}
 0x66d   :  { %534 = dma.vmem_to_hbm [thread:$0]  %s532_s4, 128, %s896_s5, [#allocation4]  }
 0x66e   :  { %748 = dma.done.wait [#allocation4], 128  }
 0x66f   :  { %749 = vsyncadd [#allocation4], 4294967168 }
 0x670   :  { %538 = vsyncpa [#allocation3], 1 }
 0x671   :  { %539 = vsyncpa [#allocation4], 1 }

</bundles_post_ra>
